<compile_context>
chip_gen: v7x
topology: tpu7x:2x2x1
jax: 0.10.0
libtpu: 0.0.40
codegen_flags: <defaults>
</compile_context>

<pallas_src>
import math

import jax
import jax.numpy as jnp
from jax.experimental import pallas as pl
from jax.experimental.pallas import tpu as pltpu

EPSILON = 1e-6
LOG_EPS = math.log(EPSILON)          # log(1e-6)

SCALE = jnp.array([100.0, 100.0, 120.0, 10.0, 120.0, 120.0, 60.0, 60.0],
                  jnp.float32)


def _elu(v):
    return jnp.where(v > 0.0, v, jnp.exp(jnp.minimum(v, 0.0)) - 1.0)


def vae_kernel(x_ref, eps_ref,
               w15_ref, b15_ref,   # fused fc1(scaled)+fc5: (40, 8), (40, 1)
               w2_ref, b2_ref,     # fc2: (32, 32), (32, 1)
               w3_ref, b3_ref,     # fc31..fc34 stacked: (4, 32), (4, 1)
               w4c_ref,            # [normalized fc4; I2; 0]: (8, 2)
               w6_ref,             # fc61/fc62 stacked: (8, 6)
               w7_ref, w8_ref,     # fc7: (6, 4), fc8: (8, 6)
               out_ref):           # packed outputs: (24, TB)
    x = x_ref[...]                                          # (8, TB) raw input

    # One MXU pass over the input feeds both the regressor trunk (fc1, with the
    # per-feature scale already folded into the weight) and the encoder (fc5).
    h0 = jnp.dot(w15_ref[...], x,
                 preferred_element_type=jnp.float32) + b15_ref[...]   # (40, TB)
    h1 = jnp.maximum(h0[0:32, :], 0.0)                      # relu(fc1(x*scale))
    e = _elu(h0[32:38, :])                                  # elu(fc5(x)), (6, TB)

    # fc2 -> relu
    h2 = jnp.dot(w2_ref[...], h1,
                 preferred_element_type=jnp.float32) + b2_ref[...]
    h2 = jnp.maximum(h2, 0.0)                               # (32, TB)

    # four 1-unit heads (fc31..fc34) fused into one (4, 32) matmul
    heads = jnp.dot(w3_ref[...], h2,
                    preferred_element_type=jnp.float32) + b3_ref[...]
    heads = jnp.clip(heads, LOG_EPS, -LOG_EPS)
    heads = jnp.log(jnp.exp(heads) + 1.0) + 1.0             # softplus(.) + 1

    y1b = heads[0:1, :]   # fc31
    y1a = heads[1:2, :]   # fc32
    y2b = heads[2:3, :]   # fc33
    y2a = heads[3:4, :]   # fc34
    inv1 = pl.reciprocal(jnp.maximum(y1a + y1b, EPSILON), approx=True)
    inv2 = pl.reciprocal(jnp.maximum(y2a + y2b, EPSILON), approx=True)
    y1 = -5.0 + 10.0 * (y1b * inv1)                          # (1, TB)
    y2 = 0.154333 * (y2b * inv2)                             # (1, TB)

    # pz_mu (= normalized fc4 @ [y1; y2]) and the packed copy of y fall out of
    # one broadcast-FMA against the precomputed (8, 2) coefficient matrix:
    #   rows 0:4 = pz_mu, row 4 = y1, row 5 = y2, rows 6:8 = 0
    c = w4c_ref[...]
    tail = c[:, 0:1] * y1 + c[:, 1:2] * y2                   # (8, TB)

    # encoder heads fc61/fc62 fused: one dot produces [mu; logvar]
    ml = jnp.dot(w6_ref[...], e, preferred_element_type=jnp.float32)   # (8, TB)
    mu = ml[0:4, :]
    logvar = ml[4:8, :]

    # reparameterize: std = exp(0.5*logvar); eps ~ U[0,1) (torch.rand_like)
    z = mu + eps_ref[...] * jnp.exp(0.5 * logvar)            # (4, TB)

    # decoder: fc7 -> elu -> fc8
    d = _elu(jnp.dot(w7_ref[...], z, preferred_element_type=jnp.float32))
    recon = jnp.dot(w8_ref[...], d, preferred_element_type=jnp.float32)  # (8, TB)

    # single lane-dense output slab (aligned 8-row stores):
    #   rows [0:8)=recon, [8:12)=mu, [12:16)=logvar, [16:20)=pz_mu,
    #   row 20=y1, row 21=y2, rows [22:24)=0
    out_ref[0:8, :] = recon
    out_ref[8:16, :] = ml
    out_ref[16:24, :] = tail


def _round_up(n, m):
    return ((n + m - 1) // m) * m


def vae_forward(x, eps, params, block_b=1024):
    """x: (B, 8) raw input, eps: (B, 4) uniform noise.

    Returns (recon, mu, logvar, pz_mu, y) in PyTorch (batch, features) layout.
    """
    B = x.shape[0]
    # batch goes on the lane axis; wrapper-side transpose is layout plumbing
    xT = x.T.astype(jnp.float32)        # (8, B)
    epsT = eps.T.astype(jnp.float32)    # (4, B)

    tb = min(block_b, _round_up(B, 128))
    Bp = _round_up(B, tb)
    if Bp != B:
        xT = jnp.pad(xT, ((0, 0), (0, Bp - B)))
        epsT = jnp.pad(epsT, ((0, 0), (0, Bp - B)))

    def wspec(shape):
        # full-extent block, constant index -> resident in VMEM across the grid
        return pl.BlockSpec(shape, lambda i: (0, 0))

    out = pl.pallas_call(
        vae_kernel,
        out_shape=jax.ShapeDtypeStruct((24, Bp), jnp.float32),
        grid=(Bp // tb,),
        in_specs=[
            pl.BlockSpec((8, tb), lambda i: (0, i)),    # x
            pl.BlockSpec((4, tb), lambda i: (0, i)),    # eps
            wspec((40, 8)), wspec((40, 1)),             # w15, b15
            wspec((32, 32)), wspec((32, 1)),            # w2, b2
            wspec((4, 32)), wspec((4, 1)),              # w3, b3
            wspec((8, 2)),                              # w4c
            wspec((8, 6)),                              # w6
            wspec((6, 4)),                              # w7
            wspec((8, 6)),                              # w8
        ],
        out_specs=pl.BlockSpec((24, tb), lambda i: (0, i)),
        compiler_params=pltpu.CompilerParams(
            dimension_semantics=("parallel",)),
    )(xT, epsT,
      params["w15"], params["b15"],
      params["w2"], params["b2"],
      params["w3"], params["b3"],
      params["w4c"], params["w6"],
      params["w7"], params["w8"])

    out = out[:, :B]
    recon = out[0:8].T
    mu = out[8:12].T
    logvar = out[12:16].T
    pz_mu = out[16:20].T
    y = out[20:22].T
    return recon, mu, logvar, pz_mu, y


def init_raw_params(key):
    """Deterministic synthetic parameters in native PyTorch (out, in) layout."""
    def lin(k, out_f, in_f, bias=True):
        kw, kb = jax.random.split(k)
        bound = 1.0 / math.sqrt(in_f)
        w = jax.random.uniform(kw, (out_f, in_f), jnp.float32, -bound, bound)
        b = (jax.random.uniform(kb, (out_f,), jnp.float32, -bound, bound)
             if bias else None)
        return w, b

    keys = jax.random.split(key, 12)
    raw = {}
    raw["w1"], raw["b1"] = lin(keys[0], 32, 8)
    raw["w2"], raw["b2"] = lin(keys[1], 32, 32)
    raw["w31"], raw["b31"] = lin(keys[2], 1, 32)
    raw["w32"], raw["b32"] = lin(keys[3], 1, 32)
    raw["w33"], raw["b33"] = lin(keys[4], 1, 32)
    raw["w34"], raw["b34"] = lin(keys[5], 1, 32)
    raw["w4"], _ = lin(keys[6], 4, 2)       # ConstrinedLinear forward uses no bias
    raw["w5"], _ = lin(keys[7], 6, 8, bias=False)
    raw["w61"], _ = lin(keys[8], 4, 6, bias=False)
    raw["w62"], _ = lin(keys[9], 4, 6, bias=False)
    raw["w7"], _ = lin(keys[10], 6, 4, bias=False)
    raw["w8"], _ = lin(keys[11], 8, 6, bias=False)
    return raw


def pack_params(raw):
    """Hoist all weight-only work out of the kernel (scale fold, layer fusion,
    ConstrinedLinear normalization) and pad to kernel-friendly shapes."""
    # fc1(x*s) == (W1 * s) @ x + b1 ; stack fc5 below it, pad rows 38 -> 40.
    w15 = jnp.concatenate([raw["w1"] * SCALE[None, :], raw["w5"]], axis=0)
    w15 = jnp.pad(w15, ((0, 2), (0, 0)))                         # (40, 8)
    b15 = jnp.concatenate([raw["b1"], jnp.zeros((8,), jnp.float32)]).reshape(40, 1)

    w3 = jnp.concatenate([raw["w31"], raw["w32"], raw["w33"], raw["w34"]],
                         axis=0)                                  # (4, 32)
    b3 = jnp.concatenate([raw["b31"], raw["b32"], raw["b33"], raw["b34"]]
                         ).reshape(4, 1)

    # ConstrinedLinear: weight / (frobenius_norm(weight) + 1e-7); append I2 so
    # the same broadcast-FMA also copies [y1; y2] into the output slab.
    w4n = raw["w4"] / (jnp.linalg.norm(raw["w4"]) + 1e-7)         # (4, 2)
    w4c = jnp.concatenate(
        [w4n, jnp.eye(2, dtype=jnp.float32), jnp.zeros((2, 2), jnp.float32)],
        axis=0)                                                   # (8, 2)

    w6 = jnp.concatenate([raw["w61"], raw["w62"]], axis=0)        # (8, 6)

    return dict(
        w15=w15, b15=b15,
        w2=raw["w2"], b2=raw["b2"].reshape(32, 1),
        w3=w3, b3=b3,
        w4c=w4c, w6=w6,
        w7=raw["w7"], w8=raw["w8"],
    )


def vae_reference(x, eps, raw):
    """Pure-JAX reimplementation of the PyTorch forward (for validation)."""
    xs = x * SCALE[None, :]
    h = jax.nn.relu(xs @ raw["w1"].T + raw["b1"])
    h = jax.nn.relu(h @ raw["w2"].T + raw["b2"])

    def head(w, b):
        v = h @ w.T + b
        v = jnp.clip(v, LOG_EPS, -LOG_EPS)
        return jnp.log(jnp.exp(v) + 1.0) + 1.0

    y1b = head(raw["w31"], raw["b31"])
    y1a = head(raw["w32"], raw["b32"])
    y2b = head(raw["w33"], raw["b33"])
    y2a = head(raw["w34"], raw["b34"])
    y1 = -5.0 + 10.0 * (y1b / jnp.maximum(y1a + y1b, EPSILON))
    y2 = 0.154333 * (y2b / jnp.maximum(y2a + y2b, EPSILON))
    y = jnp.concatenate([y1, y2], axis=1)

    w4n = raw["w4"] / (jnp.linalg.norm(raw["w4"]) + 1e-7)
    pz_mu = y @ w4n.T

    e = jax.nn.elu(x @ raw["w5"].T)
    mu = e @ raw["w61"].T
    logvar = e @ raw["w62"].T
    z = mu + eps * jnp.exp(0.5 * logvar)
    d = jax.nn.elu(z @ raw["w7"].T)
    recon = d @ raw["w8"].T
    return recon, mu, logvar, pz_mu, y


if __name__ == "__main__":
    key = jax.random.PRNGKey(0)
    k_params, k_x, k_eps = jax.random.split(key, 3)

    raw = init_raw_params(k_params)
    params = pack_params(raw)

    # --- small batch: validate against the pure-JAX reference ---------------
    B = 4
    x = jax.random.normal(k_x, (B, 8), jnp.float32)
    # eps drawn outside the kernel (matches torch.rand_like: uniform [0, 1))
    eps = jax.random.uniform(k_eps, (B, 4), jnp.float32)

    outs = jax.block_until_ready(vae_forward(x, eps, params))
    refs = vae_reference(x, eps, raw)

    names = ("recon", "mu", "logvar", "pz_mu", "y")
    shapes = ((B, 8), (B, 4), (B, 4), (B, 4), (B, 2))
    for name, shape, got, want in zip(names, shapes, outs, refs):
        assert got.shape == shape, (name, got.shape)
        assert bool(jnp.all(jnp.isfinite(got))), name
        # loose tolerance: approx reciprocal (EUP) + MXU f32 accumulation
        assert bool(jnp.allclose(got, want, rtol=5e-2, atol=5e-2)), (
            name, float(jnp.max(jnp.abs(got - want))))

    # --- larger batch: exercises the batch grid (multiple blocks + padding) --
    B2 = 2500
    x2 = jax.random.normal(k_x, (B2, 8), jnp.float32)
    eps2 = jax.random.uniform(k_eps, (B2, 4), jnp.float32)
    outs2 = jax.block_until_ready(vae_forward(x2, eps2, params))
    assert outs2[0].shape == (B2, 8) and outs2[4].shape == (B2, 2)

    print("KERNEL_OK")
</pallas_src>

<mosaic_0001>
module attributes {stable_mosaic.version = 11 : i64} {
  func.func @vae_kernel(%arg0: i32, %arg1: memref<8x128xf32, #tpu.memory_space<vmem>>, %arg2: memref<4x128xf32, #tpu.memory_space<vmem>>, %arg3: memref<40x8xf32, #tpu.memory_space<vmem>>, %arg4: memref<40x1xf32, #tpu.memory_space<vmem>>, %arg5: memref<32x32xf32, #tpu.memory_space<vmem>>, %arg6: memref<32x1xf32, #tpu.memory_space<vmem>>, %arg7: memref<4x32xf32, #tpu.memory_space<vmem>>, %arg8: memref<4x1xf32, #tpu.memory_space<vmem>>, %arg9: memref<8x2xf32, #tpu.memory_space<vmem>>, %arg10: memref<8x6xf32, #tpu.memory_space<vmem>>, %arg11: memref<6x4xf32, #tpu.memory_space<vmem>>, %arg12: memref<8x6xf32, #tpu.memory_space<vmem>>, %arg13: memref<24x128xf32, #tpu.memory_space<vmem>>) attributes {dimension_semantics = [#tpu.dimension_semantics<parallel>], iteration_bounds = array<i64: 1>, scalar_prefetch = 0 : i64, scratch_operands = 0 : i64, tpu.core_type = #tpu.core_type<tc>, window_params = [{transform_indices = @transform_0, window_bounds = array<i64: 8, 128>}, {transform_indices = @transform_1, window_bounds = array<i64: 4, 128>}, {pipeline_mode = #tpu.pipeline_mode<synchronous>, transform_indices = @transform_2, window_bounds = array<i64: 40, 8>}, {pipeline_mode = #tpu.pipeline_mode<synchronous>, transform_indices = @transform_3, window_bounds = array<i64: 40, 1>}, {pipeline_mode = #tpu.pipeline_mode<synchronous>, transform_indices = @transform_4, window_bounds = array<i64: 32, 32>}, {pipeline_mode = #tpu.pipeline_mode<synchronous>, transform_indices = @transform_5, window_bounds = array<i64: 32, 1>}, {pipeline_mode = #tpu.pipeline_mode<synchronous>, transform_indices = @transform_6, window_bounds = array<i64: 4, 32>}, {pipeline_mode = #tpu.pipeline_mode<synchronous>, transform_indices = @transform_7, window_bounds = array<i64: 4, 1>}, {pipeline_mode = #tpu.pipeline_mode<synchronous>, transform_indices = @transform_8, window_bounds = array<i64: 8, 2>}, {pipeline_mode = #tpu.pipeline_mode<synchronous>, transform_indices = @transform_9, window_bounds = array<i64: 8, 6>}, {pipeline_mode = #tpu.pipeline_mode<synchronous>, transform_indices = @transform_10, window_bounds = array<i64: 6, 4>}, {pipeline_mode = #tpu.pipeline_mode<synchronous>, transform_indices = @transform_11, window_bounds = array<i64: 8, 6>}, {transform_indices = @transform_12, window_bounds = array<i64: 24, 128>}]} {
    %c0 = arith.constant 0 : index
    %c0_0 = arith.constant 0 : index
    %0 = vector.load %arg1[%c0, %c0_0] : memref<8x128xf32, #tpu.memory_space<vmem>>, vector<8x128xf32>
    %c0_1 = arith.constant 0 : index
    %c0_2 = arith.constant 0 : index
    %1 = vector.load %arg3[%c0_1, %c0_2] : memref<40x8xf32, #tpu.memory_space<vmem>>, vector<40x8xf32>
    %cst = arith.constant dense<0.000000e+00> : vector<40x128xf32>
    %2 = tpu.matmul %1, %0, %cst {dimension_numbers = #tpu.dot_dimension_numbers<[1], [0], [0], [1], [0, 0, 1, 1], [], []>} : vector<40x8xf32>, vector<8x128xf32>, vector<40x128xf32> -> vector<40x128xf32>
    %c0_3 = arith.constant 0 : index
    %c0_4 = arith.constant 0 : index
    %3 = vector.load %arg4[%c0_3, %c0_4] : memref<40x1xf32, #tpu.memory_space<vmem>>, vector<40x1xf32>
    %4 = vector.broadcast %3 : vector<40x1xf32> to vector<40x128xf32>
    %5 = arith.addf %2, %4 : vector<40x128xf32>
    %6 = vector.extract_strided_slice %5 {offsets = [0, 0], sizes = [32, 128], strides = [1, 1]} : vector<40x128xf32> to vector<32x128xf32>
    %cst_5 = arith.constant 0.000000e+00 : f32
    %7 = vector.broadcast %cst_5 : f32 to vector<32x128xf32>
    %8 = arith.maximumf %6, %7 : vector<32x128xf32>
    %9 = vector.extract_strided_slice %5 {offsets = [32, 0], sizes = [6, 128], strides = [1, 1]} : vector<40x128xf32> to vector<6x128xf32>
    %cst_6 = arith.constant 0.000000e+00 : f32
    %10 = vector.broadcast %cst_6 : f32 to vector<6x128xf32>
    %11 = arith.cmpf ogt, %9, %10 : vector<6x128xf32>
    %cst_7 = arith.constant 0.000000e+00 : f32
    %12 = vector.broadcast %cst_7 : f32 to vector<6x128xf32>
    %13 = arith.minimumf %9, %12 : vector<6x128xf32>
    %14 = math.exp %13 : vector<6x128xf32>
    %cst_8 = arith.constant 1.000000e+00 : f32
    %15 = vector.broadcast %cst_8 : f32 to vector<6x128xf32>
    %16 = arith.subf %14, %15 : vector<6x128xf32>
    %17 = arith.select %11, %9, %16 : vector<6x128xi1>, vector<6x128xf32>
    %c0_9 = arith.constant 0 : index
    %c0_10 = arith.constant 0 : index
    %18 = vector.load %arg5[%c0_9, %c0_10] : memref<32x32xf32, #tpu.memory_space<vmem>>, vector<32x32xf32>
    %cst_11 = arith.constant dense<0.000000e+00> : vector<32x128xf32>
    %19 = tpu.matmul %18, %8, %cst_11 {dimension_numbers = #tpu.dot_dimension_numbers<[1], [0], [0], [1], [0, 0, 1, 1], [], []>} : vector<32x32xf32>, vector<32x128xf32>, vector<32x128xf32> -> vector<32x128xf32>
    %c0_12 = arith.constant 0 : index
    %c0_13 = arith.constant 0 : index
    %20 = vector.load %arg6[%c0_12, %c0_13] : memref<32x1xf32, #tpu.memory_space<vmem>>, vector<32x1xf32>
    %21 = vector.broadcast %20 : vector<32x1xf32> to vector<32x128xf32>
    %22 = arith.addf %19, %21 : vector<32x128xf32>
    %cst_14 = arith.constant 0.000000e+00 : f32
    %23 = vector.broadcast %cst_14 : f32 to vector<32x128xf32>
    %24 = arith.maximumf %22, %23 : vector<32x128xf32>
    %c0_15 = arith.constant 0 : index
    %c0_16 = arith.constant 0 : index
    %25 = vector.load %arg7[%c0_15, %c0_16] : memref<4x32xf32, #tpu.memory_space<vmem>>, vector<4x32xf32>
    %cst_17 = arith.constant dense<0.000000e+00> : vector<4x128xf32>
    %26 = tpu.matmul %25, %24, %cst_17 {dimension_numbers = #tpu.dot_dimension_numbers<[1], [0], [0], [1], [0, 0, 1, 1], [], []>} : vector<4x32xf32>, vector<32x128xf32>, vector<4x128xf32> -> vector<4x128xf32>
    %c0_18 = arith.constant 0 : index
    %c0_19 = arith.constant 0 : index
    %27 = vector.load %arg8[%c0_18, %c0_19] : memref<4x1xf32, #tpu.memory_space<vmem>>, vector<4x1xf32>
    %28 = vector.broadcast %27 : vector<4x1xf32> to vector<4x128xf32>
    %29 = arith.addf %26, %28 : vector<4x128xf32>
    %cst_20 = arith.constant -13.8155107 : f32
    %cst_21 = arith.constant 13.8155107 : f32
    %30 = vector.broadcast %cst_20 : f32 to vector<4x128xf32>
    %31 = arith.maximumf %30, %29 : vector<4x128xf32>
    %32 = vector.broadcast %cst_21 : f32 to vector<4x128xf32>
    %33 = arith.minimumf %32, %31 : vector<4x128xf32>
    %34 = math.exp %33 : vector<4x128xf32>
    %cst_22 = arith.constant 1.000000e+00 : f32
    %35 = vector.broadcast %cst_22 : f32 to vector<4x128xf32>
    %36 = arith.addf %34, %35 : vector<4x128xf32>
    %37 = math.log %36 : vector<4x128xf32>
    %cst_23 = arith.constant 1.000000e+00 : f32
    %38 = vector.broadcast %cst_23 : f32 to vector<4x128xf32>
    %39 = arith.addf %37, %38 : vector<4x128xf32>
    %40 = vector.extract_strided_slice %39 {offsets = [0, 0], sizes = [1, 128], strides = [1, 1]} : vector<4x128xf32> to vector<1x128xf32>
    %41 = vector.extract_strided_slice %39 {offsets = [1, 0], sizes = [1, 128], strides = [1, 1]} : vector<4x128xf32> to vector<1x128xf32>
    %42 = vector.extract_strided_slice %39 {offsets = [2, 0], sizes = [1, 128], strides = [1, 1]} : vector<4x128xf32> to vector<1x128xf32>
    %43 = vector.extract_strided_slice %39 {offsets = [3, 0], sizes = [1, 128], strides = [1, 1]} : vector<4x128xf32> to vector<1x128xf32>
    %44 = arith.addf %41, %40 : vector<1x128xf32>
    %cst_24 = arith.constant 9.99999997E-7 : f32
    %45 = vector.broadcast %cst_24 : f32 to vector<1x128xf32>
    %46 = arith.maximumf %44, %45 : vector<1x128xf32>
    %47 = tpu.reciprocal %46 {approx = true} : vector<1x128xf32> -> vector<1x128xf32>
    %48 = arith.addf %43, %42 : vector<1x128xf32>
    %cst_25 = arith.constant 9.99999997E-7 : f32
    %49 = vector.broadcast %cst_25 : f32 to vector<1x128xf32>
    %50 = arith.maximumf %48, %49 : vector<1x128xf32>
    %51 = tpu.reciprocal %50 {approx = true} : vector<1x128xf32> -> vector<1x128xf32>
    %52 = arith.mulf %40, %47 : vector<1x128xf32>
    %cst_26 = arith.constant 1.000000e+01 : f32
    %53 = vector.broadcast %cst_26 : f32 to vector<1x128xf32>
    %54 = arith.mulf %53, %52 : vector<1x128xf32>
    %cst_27 = arith.constant -5.000000e+00 : f32
    %55 = vector.broadcast %cst_27 : f32 to vector<1x128xf32>
    %56 = arith.addf %55, %54 : vector<1x128xf32>
    %57 = arith.mulf %42, %51 : vector<1x128xf32>
    %cst_28 = arith.constant 1.543330e-01 : f32
    %58 = vector.broadcast %cst_28 : f32 to vector<1x128xf32>
    %59 = arith.mulf %58, %57 : vector<1x128xf32>
    %c0_29 = arith.constant 0 : index
    %c0_30 = arith.constant 0 : index
    %60 = vector.load %arg9[%c0_29, %c0_30] : memref<8x2xf32, #tpu.memory_space<vmem>>, vector<8x2xf32>
    %61 = vector.extract_strided_slice %60 {offsets = [0, 0], sizes = [8, 1], strides = [1, 1]} : vector<8x2xf32> to vector<8x1xf32>
    %62 = vector.broadcast %61 : vector<8x1xf32> to vector<8x128xf32>
    %63 = vector.broadcast %56 : vector<1x128xf32> to vector<8x128xf32>
    %64 = arith.mulf %62, %63 : vector<8x128xf32>
    %65 = vector.extract_strided_slice %60 {offsets = [0, 1], sizes = [8, 1], strides = [1, 1]} : vector<8x2xf32> to vector<8x1xf32>
    %66 = vector.broadcast %65 : vector<8x1xf32> to vector<8x128xf32>
    %67 = vector.broadcast %59 : vector<1x128xf32> to vector<8x128xf32>
    %68 = arith.mulf %66, %67 : vector<8x128xf32>
    %69 = arith.addf %64, %68 : vector<8x128xf32>
    %c0_31 = arith.constant 0 : index
    %c0_32 = arith.constant 0 : index
    %70 = vector.load %arg10[%c0_31, %c0_32] : memref<8x6xf32, #tpu.memory_space<vmem>>, vector<8x6xf32>
    %cst_33 = arith.constant dense<0.000000e+00> : vector<8x128xf32>
    %71 = tpu.matmul %70, %17, %cst_33 {dimension_numbers = #tpu.dot_dimension_numbers<[1], [0], [0], [1], [0, 0, 1, 1], [], []>} : vector<8x6xf32>, vector<6x128xf32>, vector<8x128xf32> -> vector<8x128xf32>
    %72 = vector.extract_strided_slice %71 {offsets = [0, 0], sizes = [4, 128], strides = [1, 1]} : vector<8x128xf32> to vector<4x128xf32>
    %73 = vector.extract_strided_slice %71 {offsets = [4, 0], sizes = [4, 128], strides = [1, 1]} : vector<8x128xf32> to vector<4x128xf32>
    %c0_34 = arith.constant 0 : index
    %c0_35 = arith.constant 0 : index
    %74 = vector.load %arg2[%c0_34, %c0_35] : memref<4x128xf32, #tpu.memory_space<vmem>>, vector<4x128xf32>
    %cst_36 = arith.constant 5.000000e-01 : f32
    %75 = vector.broadcast %cst_36 : f32 to vector<4x128xf32>
    %76 = arith.mulf %75, %73 : vector<4x128xf32>
    %77 = math.exp %76 : vector<4x128xf32>
    %78 = arith.mulf %74, %77 : vector<4x128xf32>
    %79 = arith.addf %72, %78 : vector<4x128xf32>
    %c0_37 = arith.constant 0 : index
    %c0_38 = arith.constant 0 : index
    %80 = vector.load %arg11[%c0_37, %c0_38] : memref<6x4xf32, #tpu.memory_space<vmem>>, vector<6x4xf32>
    %cst_39 = arith.constant dense<0.000000e+00> : vector<6x128xf32>
    %81 = tpu.matmul %80, %79, %cst_39 {dimension_numbers = #tpu.dot_dimension_numbers<[1], [0], [0], [1], [0, 0, 1, 1], [], []>} : vector<6x4xf32>, vector<4x128xf32>, vector<6x128xf32> -> vector<6x128xf32>
    %cst_40 = arith.constant 0.000000e+00 : f32
    %82 = vector.broadcast %cst_40 : f32 to vector<6x128xf32>
    %83 = arith.cmpf ogt, %81, %82 : vector<6x128xf32>
    %cst_41 = arith.constant 0.000000e+00 : f32
    %84 = vector.broadcast %cst_41 : f32 to vector<6x128xf32>
    %85 = arith.minimumf %81, %84 : vector<6x128xf32>
    %86 = math.exp %85 : vector<6x128xf32>
    %cst_42 = arith.constant 1.000000e+00 : f32
    %87 = vector.broadcast %cst_42 : f32 to vector<6x128xf32>
    %88 = arith.subf %86, %87 : vector<6x128xf32>
    %89 = arith.select %83, %81, %88 : vector<6x128xi1>, vector<6x128xf32>
    %c0_43 = arith.constant 0 : index
    %c0_44 = arith.constant 0 : index
    %90 = vector.load %arg12[%c0_43, %c0_44] : memref<8x6xf32, #tpu.memory_space<vmem>>, vector<8x6xf32>
    %cst_45 = arith.constant dense<0.000000e+00> : vector<8x128xf32>
    %91 = tpu.matmul %90, %89, %cst_45 {dimension_numbers = #tpu.dot_dimension_numbers<[1], [0], [0], [1], [0, 0, 1, 1], [], []>} : vector<8x6xf32>, vector<6x128xf32>, vector<8x128xf32> -> vector<8x128xf32>
    %c0_46 = arith.constant 0 : index
    %c0_47 = arith.constant 0 : index
    %92 = vector.load %arg13[%c0_46, %c0_47] : memref<24x128xf32, #tpu.memory_space<vmem>>, vector<8x128xf32>
    tpu.vector_store %arg13[%c0_46, %c0_47], %91 {strides = array<i32>} : memref<24x128xf32, #tpu.memory_space<vmem>>, vector<8x128xf32>,
    %c8 = arith.constant 8 : index
    %c0_48 = arith.constant 0 : index
    %93 = vector.load %arg13[%c8, %c0_48] : memref<24x128xf32, #tpu.memory_space<vmem>>, vector<8x128xf32>
    tpu.vector_store %arg13[%c8, %c0_48], %71 {strides = array<i32>} : memref<24x128xf32, #tpu.memory_space<vmem>>, vector<8x128xf32>,
    %c16 = arith.constant 16 : index
    %c0_49 = arith.constant 0 : index
    %94 = vector.load %arg13[%c16, %c0_49] : memref<24x128xf32, #tpu.memory_space<vmem>>, vector<8x128xf32>
    tpu.vector_store %arg13[%c16, %c0_49], %69 {strides = array<i32>} : memref<24x128xf32, #tpu.memory_space<vmem>>, vector<8x128xf32>,
    return
  }
  func.func @transform_0(%arg0: i32) -> (i32, i32) {
    %c0_i32 = arith.constant 0 : i32
    %c0_i32_0 = arith.constant 0 : i32
    return %c0_i32, %arg0 : i32, i32
  }
  func.func @transform_1(%arg0: i32) -> (i32, i32) {
    %c0_i32 = arith.constant 0 : i32
    %c0_i32_0 = arith.constant 0 : i32
    return %c0_i32, %arg0 : i32, i32
  }
  func.func @transform_2(%arg0: i32) -> (i32, i32) {
    %c0_i32 = arith.constant 0 : i32
    %c0_i32_0 = arith.constant 0 : i32
    %c0_i32_1 = arith.constant 0 : i32
    return %c0_i32, %c0_i32_0 : i32, i32
  }
  func.func @transform_3(%arg0: i32) -> (i32, i32) {
    %c0_i32 = arith.constant 0 : i32
    %c0_i32_0 = arith.constant 0 : i32
    %c0_i32_1 = arith.constant 0 : i32
    return %c0_i32, %c0_i32_0 : i32, i32
  }
  func.func @transform_4(%arg0: i32) -> (i32, i32) {
    %c0_i32 = arith.constant 0 : i32
    %c0_i32_0 = arith.constant 0 : i32
    %c0_i32_1 = arith.constant 0 : i32
    return %c0_i32, %c0_i32_0 : i32, i32
  }
  func.func @transform_5(%arg0: i32) -> (i32, i32) {
    %c0_i32 = arith.constant 0 : i32
    %c0_i32_0 = arith.constant 0 : i32
    %c0_i32_1 = arith.constant 0 : i32
    return %c0_i32, %c0_i32_0 : i32, i32
  }
  func.func @transform_6(%arg0: i32) -> (i32, i32) {
    %c0_i32 = arith.constant 0 : i32
    %c0_i32_0 = arith.constant 0 : i32
    %c0_i32_1 = arith.constant 0 : i32
    return %c0_i32, %c0_i32_0 : i32, i32
  }
  func.func @transform_7(%arg0: i32) -> (i32, i32) {
    %c0_i32 = arith.constant 0 : i32
    %c0_i32_0 = arith.constant 0 : i32
    %c0_i32_1 = arith.constant 0 : i32
    return %c0_i32, %c0_i32_0 : i32, i32
  }
  func.func @transform_8(%arg0: i32) -> (i32, i32) {
    %c0_i32 = arith.constant 0 : i32
    %c0_i32_0 = arith.constant 0 : i32
    %c0_i32_1 = arith.constant 0 : i32
    return %c0_i32, %c0_i32_0 : i32, i32
  }
  func.func @transform_9(%arg0: i32) -> (i32, i32) {
    %c0_i32 = arith.constant 0 : i32
    %c0_i32_0 = arith.constant 0 : i32
    %c0_i32_1 = arith.constant 0 : i32
    return %c0_i32, %c0_i32_0 : i32, i32
  }
  func.func @transform_10(%arg0: i32) -> (i32, i32) {
    %c0_i32 = arith.constant 0 : i32
    %c0_i32_0 = arith.constant 0 : i32
    %c0_i32_1 = arith.constant 0 : i32
    return %c0_i32, %c0_i32_0 : i32, i32
  }
  func.func @transform_11(%arg0: i32) -> (i32, i32) {
    %c0_i32 = arith.constant 0 : i32
    %c0_i32_0 = arith.constant 0 : i32
    %c0_i32_1 = arith.constant 0 : i32
    return %c0_i32, %c0_i32_0 : i32, i32
  }
  func.func @transform_12(%arg0: i32) -> (i32, i32) {
    %c0_i32 = arith.constant 0 : i32
    %c0_i32_0 = arith.constant 0 : i32
    return %c0_i32, %arg0 : i32, i32
  }
}

</mosaic_0001>

<bundles_post_ra>
// kernel: tpu_custom_call.1
= control target key start
LH: loop header
LB: loop body
LE: loop exit
PB: predicated region body
PF: predicated region fallthrough
CT: control target
= control target key end

     0   :  { %vm78_vm0 = vcmask 64512   ;;  %v878_v2 = vmov 0.0   ;;  %vm879_vm1 = vmmov 0   ;;  %v880_v3 = vmov 0   ;;  %s1077_s0 = inlined_call_operand.vmem [shape: f32[8,128], index: 0, kind: input, shape index: {}]   ;;  %s1078_s1 = inlined_call_operand.vmem [shape: f32[4,128], index: 1, kind: input, shape index: {}]   ;;  %s1079_s2 = inlined_call_operand.vmem [shape: f32[40,8], index: 2, kind: input, shape index: {}]   ;;  %s1080_s3 = inlined_call_operand.vmem [shape: f32[40,1], index: 3, kind: input, shape index: {}]   ;;  %s1081_s4 = inlined_call_operand.vmem [shape: f32[32,32], index: 4, kind: input, shape index: {}]   ;;  %s1082_s5 = inlined_call_operand.vmem [shape: f32[32,1], index: 5, kind: input, shape index: {}]   ;;  %s1083_s6 = inlined_call_operand.vmem [shape: f32[4,32], index: 6, kind: input, shape index: {}]   ;;  %s1084_s7 = inlined_call_operand.vmem [shape: f32[4,1], index: 7, kind: input, shape index: {}]   ;;  %s1085_s8 = inlined_call_operand.vmem [shape: f32[8,2], index: 8, kind: input, shape index: {}]   ;;  %s1086_s9 = inlined_call_operand.vmem [shape: f32[8,6], index: 9, kind: input, shape index: {}]   ;;  %s1087_s10 = inlined_call_operand.vmem [shape: f32[6,4], index: 10, kind: input, shape index: {}]   ;;  %s1088_s11 = inlined_call_operand.vmem [shape: f32[8,6], index: 11, kind: input, shape index: {}]   ;;  %s1089_s12 = inlined_call_operand.hbm [shape: f32[24,128], index: 12, kind: output, shape index: {}]  }
   0x1   :  { %v42_v0 = vld [vmem:[%s1077_s0] sm:$0xff]  ;;  %759 = vmatprep.subr.mxu0 %v878_v2  ;;  %761 = vmatprep.mubr.msk.f32.mxu0 %vm879_vm1, %v878_v2  ;;  %v50_v5 = vld [vmem:[%s1080_s3 + $0x10] sm:$0xff]  ;;  %v44_v6 = vld [vmem:[%s1079_s2 + $0x8] sm:$0xff] }
   0x2   :  { %v43_v1 = vld [vmem:[%s1079_s2] sm:$0xff]  ;;  %760 = vmatpush3.msra.mxu0 %v42_v0  ;;  %838 = vset.pattern.permute.xlu0 %v880_v3  ;;  %v49_v7 = vld [vmem:[%s1080_s3 + $0x8] sm:$0xff] }
   0x3   :  { %v48_v4 = vld [vmem:[%s1080_s3] sm:$0xff]  ;;  %762 = vmatmul.mubr.msk.f32.vlgmr.msra.gmra.mrb[0].mxu0 %vm78_vm0, %v43_v1  ;;  %839 = vset.pattern.permute.xlu1 %v880_v3 }
   0x4   :  { %55 = vperm.xlu0 %838, %v48_v4   ;;  %764 = vmatprep.mubr.msk.f32.mxu0 %vm879_vm1, %v878_v2 }
   0x5   :  { %65 = vperm.xlu1 %839, %v50_v5   ;;  %806 = vmatprep.subr.mxu0 %v878_v2 }
   0x6   :  { %17 = vsyncpa [#allocation3], 0  ;;  %v51_v8 = vld [vmem:[%s1080_s3 + $0x18] sm:$0xff]  ;;  %v45_v9 = vld [vmem:[%s1079_s2 + $0x10] sm:$0xff]  ;;  %vm222_vm2 = vcmask 261120   ;;  %v881_v47 = vmov 0.0|0.0  }
   0x7   :  { %765 = vmatmul.mubr.msk.f32.gmra.mrb[2].mxu0 %vm78_vm0, %v44_v6  ;;  %v52_v10 = vld [vmem:[%s1080_s3 + $0x20] sm:$0xff]  ;;  %v46_v12 = vld [vmem:[%s1079_s2 + $0x18] sm:$0xff]  ;;  %v199_v13 = vld [vmem:[%s1082_s5 + $0x8] sm:$0xff]  ;;  %v882_v48 = vmov 1   ;;  %vm451_vm3 = vcmask 1045504   ;;  %vm447_vm5 = vcmask 48128  }
   0x8   :  { %60 = vperm.xlu0 %838, %v49_v7   ;;  %767 = vmatprep.mubr.msk.f32.mxu0 %vm879_vm1, %v878_v2  ;;  %v198_v11 = vld [vmem:[%s1082_s5] sm:$0xff]  ;;  %v200_v14 = vld [vmem:[%s1082_s5 + $0x10] sm:$0xff]  ;;  %v201_v16 = vld [vmem:[%s1082_s5 + $0x18] sm:$0xff]  ;;  %vm539_vm6 = vcmask 1043456   ;;  %vm535_vm7 = vcmask 31744   ;;  %s883_s25 = smov [#allocation2]  }
   0x9   :  { %70 = vperm.xlu1 %839, %v51_v8   ;;  %v47_v15 = vld [vmem:[%s1079_s2 + $0x20] sm:$0xff]  ;;  %v195_v44 = vld [vmem:[%s1081_s4 + $0x8] sm:$0xff]  ;;  %v196_v45 = vld [vmem:[%s1081_s4 + $0x10] sm:$0xff]  ;;  %s704_s3 = sshll.u32 %s883_s25, 4  ;;  %s705_s3 = int_to_ptr.vmem [resolvable:$true] %s704_s3 }
   0xa   :  { %v325_v17 = vld [vmem:[%s1084_s7] sm:$0xf]  ;;  %v197_v46 = vld [vmem:[%s1081_s4 + $0x18] sm:$0xff]  ;;  %s854_s26 = scalar_lea.vmem %s705_s3, 384  ;;  %p859_p1 = scmp.lt.s32.totalorder %s705_s3, %s705_s3 }
   0xb   :  { %768 = vmatmul.mubr.msk.f32.gmra.mrb[4].mxu0 %vm78_vm0, %v45_v9  ;;  %v425_v18 = vld [vmem:[%s1085_s8] sm:$0xff]  ;;  %p855_p0 = scmp.ne.s32.totalorder %s705_s3, %s854_s26  ;;  %p860_p2 = scmp.lt.s32.totalorder %s854_s26, %s854_s26 }
   0xc   :  { %75 = vperm.xlu0 %838, %v52_v10   ;;  %770 = vmatprep.mubr.msk.f32.mxu0 %vm879_vm1, %v878_v2  ;;  %v194_v19 = vld [vmem:[%s1081_s4] sm:$0xff] }
   0xd   :  { %204 = vperm.xlu1 %839, %v198_v11   ;;  %784 = vmatprep.mubr.msk.f32.mxu1 %vm222_vm2, %v194_v19  ;;  %v324_v10 = vld [vmem:[%s1083_s6] sm:$0xf]  ;;  %p861_p3 = por %p860_p2, %p859_p1 }
   0xf   :  { %771 = vmatmul.mubr.msk.f32.gmra.mrb[6].mxu0 %vm78_vm0, %v46_v12  ;;  %v446_v12 = vld [vmem:[%s1086_s9] sm:$0xff]  ;;  %p862_p4 = pnand %p861_p3, %p855_p0 }
  0x10   :  { %209 = vperm.xlu0 %838, %v199_v13   ;;  %773 = vmatprep.mubr.msk.f32.mxu0 %vm879_vm1, %v878_v2 }
  0x11   :  { %214 = vperm.xlu1 %839, %v200_v14  }
  0x13   :  { %774 = vmatmul.mubr.msk.f32.gmra.mrb[8].mxu0 %vm78_vm0, %v47_v15 }
  0x14   :  { %219 = vperm.xlu0 %838, %v201_v16   ;;  %808 = vmatprep.mubr.msk.f32.mxu0 %vm879_vm1, %v878_v2 }
  0x15   :  { %328 = vperm.xlu1 %839, %v325_v17  }
  0x18   :  { %428 = vperm.xlu0 %838, %v425_v18  }
  0x19   :  { %840 = vset.pattern.permute.xlu1 %v882_v48 }
  0x1a   :  { %437 = vperm.xlu1 %840, %v425_v18  }
  0x1c   :  { %841 = vset.pattern.permute.xlu0 %v882_v48 }
  0x83   :  { %v56_v20 = vpop.permute.xlu0 %55 }
  0x84   :  { %v66_v28 = vpop.permute.xlu1 %65 }
  0x87   :  { %v61_v24 = vpop.permute.xlu0 %60 }
  0x88   :  { %v71_v35 = vpop.permute.xlu1 %70 }
  0x8b   :  { %v76_v49 = vpop.permute.xlu0 %75 }
  0x8c   :  { %v205_v54 = vpop.permute.xlu1 %204 }
  0x8f   :  { %v210_v53 = vpop.permute.xlu0 %209 }
  0x90   :  { %v215_v63 = vpop.permute.xlu1 %214 }
  0x93   :  { %v220_v60 = vpop.permute.xlu0 %219 }
  0x94   :  { %v329_v13 = vpop.permute.xlu1 %328 }
  0xd6   :  { %v160_v21 = vpop.f32.mrb[0].mxu0 }
  0xd7   :  { %v763_v22 = vpop.f32.mrb[1].mxu0  ;;  %v161_v23 = vadd.f32 %v160_v21, %v56_v20 }
  0xd9   :  { %v184_v29 = vmax.f32 %v161_v23, 0.0 }
  0xda   :  { %v165_v25 = vpop.f32.mrb[2].mxu0 }
  0xdb   :  { %v166_v26 = vadd.f32 %v165_v25, %v61_v24  ;;  %v766_v27 = vpop.f32.mrb[3].mxu0 }
  0xdd   :  { %v185_v30 = vmax.f32 %v166_v26, 0.0 }
  0xde   :  { %v170_v31 = vpop.f32.mrb[4].mxu0 }
  0xdf   :  { %v769_v32 = vpop.f32.mrb[5].mxu0  ;;  %v816_v33 = vpack.c.bf16 %v185_v30, %v184_v29  ;;  %v171_v34 = vadd.f32 %v170_v31, %v66_v28  ;;  %v534_v29 = vld [vmem:[%s1087_s10] sm:$0x3f] }
  0xe1   :  { %817 = vmatprep.subr.bf16.mxu1 %v816_v33  ;;  %v186_v39 = vmax.f32 %v171_v34, 0.0 }
  0xe2   :  { %v175_v36 = vpop.f32.mrb[6].mxu0  ;;  %819 = vmatpush3.bf16.msra.mxu1 %v816_v33 }
  0xe3   :  { %v176_v37 = vadd.f32 %v175_v36, %v71_v35  ;;  %v772_v38 = vpop.f32.mrb[7].mxu0  ;;  %v431_v36 = vlaneseq }
  0xe5   :  { %v187_v40 = vmax.f32 %v176_v37, 0.0  ;;  %v432_v37 = vshrl.u32 %v431_v36, 7 }
  0xe6   :  { %v180_v41 = vpop.f32.mrb[8].mxu0 }
  0xe7   :  { %v820_v42 = vpack.c.bf16 %v187_v40, %v186_v39  ;;  %v775_v43 = vpop.f32.mrb[9].mxu0  ;;  %v181_v50 = vadd.f32 %v180_v41, %v76_v49  ;;  %v442_v40 = vsub.s32 2, %v432_v37  ;;  %v429_v49 = vpop.permute.xlu0 %428 }
  0xe9   :  { %821 = vmatprep.subr.bf16.mxu1 %v820_v42  ;;  %v189_v51 = vmin.f32 %v181_v50, 0.0  ;;  %vm188_vm4 = vcmp.gt.f32.partialorder %v181_v50, 0.0 }
  0xea   :  { %823 = vmatpush3.bf16.msra.mxu1 %v820_v42  ;;  %v433_v42 = vsub.s32 0, %v432_v37 }
  0xeb   :  { %824 = vmatprep.subr.bf16.mxu1 %v881_v47  ;;  %v190_v52 = vmul.f32 1.442695, %v189_v51 }
  0xed   :  { %785 = vmatmul.mubr.msk.f32.vlgmr.msra.gmra.mrb[0].mxu1 %vm222_vm2, %v195_v44  ;;  %842 = vpow2.f32 %v190_v52 }
  0xee   :  { %787 = vmatprep.mubr.msk.f32.mxu1 %vm222_vm2, %v196_v45 }
  0xf1   :  { %788 = vmatmul.mubr.msk.f32.gmra.mrb[2].mxu1 %vm222_vm2, %v197_v46 }
  0xf2   :  { %798 = vmatprep.mubr.msk.f32.mxu1 %vm879_vm1, %v878_v2 }
  0xf7   :  { %v843_v6 = vpop.eup %842 }
  0xf8   :  { %v720_v9 = vadd.f32 -1.0, %v843_v6 }
  0xfa   :  { %v193_v11 = vsel %vm188_vm4, %v181_v50, %v720_v9 }
 0x1c0   :  { %v786_v55 = vpop.f32.mrb[0].mxu1 }
 0x1c1   :  { %v307_v56 = vadd.f32 %v786_v55, %v210_v53  ;;  %v301_v57 = vpop.f32.mrb[1].mxu1 }
 0x1c2   :  { %v302_v58 = vadd.f32 %v301_v57, %v205_v54 }
 0x1c3   :  { %v321_v59 = vmax.f32 %v307_v56, 0.0 }
 0x1c4   :  { %v320_v61 = vmax.f32 %v302_v58, 0.0  ;;  %v789_v62 = vpop.f32.mrb[2].mxu1 }
 0x1c5   :  { %v317_v0 = vadd.f32 %v789_v62, %v220_v60  ;;  %v311_v1 = vpop.f32.mrb[3].mxu1 }
 0x1c6   :  { %v825_v3 = vpack.c.bf16 %v321_v59, %v320_v61  ;;  %v312_v4 = vadd.f32 %v311_v1, %v215_v63  ;;  %v619_v59 = vld [vmem:[%s1088_s11] sm:$0xff] }
 0x1c7   :  { %v323_v5 = vmax.f32 %v317_v0, 0.0 }
 0x1c8   :  { %v322_v7 = vmax.f32 %v312_v4, 0.0  ;;  %826 = vmatpush3.bf16.msra.mxu1 %v825_v3 }
 0x1c9   :  { %827 = vmatprep.subr.bf16.mxu1 %v881_v47  ;;  %v438_v47 = vpop.permute.xlu1 %437 }
 0x1ca   :  { %v828_v8 = vpack.c.bf16 %v323_v5, %v322_v7 }
 0x1cc   :  { %829 = vmatpush3.bf16.msra.mxu1 %v828_v8 }
 0x1cd   :  { %801 = vmatprep.subr.mxu1 %v878_v2 }
 0x1cf   :  { %799 = vmatmul.mubr.msk.f32.vlgmr.msra.gmra.mrb[4].mxu1 %vm222_vm2, %v324_v10 }
 0x1d0   :  { %802 = vmatpush3.msk.msra.mxu1 %vm451_vm3, %v193_v11  ;;  %803 = vmatprep.mubr.msk.f32.mxu1 %vm879_vm1, %v878_v2 }
 0x1d1   :  { %811 = vmatprep.subr.mxu1 %v878_v2 }
 0x1d3   :  { %804 = vmatmul.mubr.msk.f32.vlgmr.msra.gmra.mrb[6].mxu1 %vm447_vm5, %v446_v12 }
 0x1d4   :  { %813 = vmatprep.mubr.msk.f32.mxu1 %vm879_vm1, %v878_v2  ;;  %v525_v2 = vld [vmem:[%s1078_s1] sm:$0xf] }
 0x2a2   :  { %v400_v14 = vpop.f32.mrb[4].mxu1 }
 0x2a3   :  { %v401_v15 = vadd.f32 %v400_v14, %v329_v13  ;;  %v800_v16 = vpop.f32.mrb[5].mxu1 }
 0x2a5   :  { %v726_v17 = vclamps-f32 %v401_v15, 13.815511 }
 0x2a6   :  { %v521_v18 = vpop.f32.mrb[6].mxu1 }
 0x2a7   :  { %v406_v19 = vmul.f32 1.442695, %v726_v17  ;;  %v526_v20 = vmul.f32 0.5, %v521_v18  ;;  %697 = vst [vmem:[#allocation2 + $0x8] sm:$0xff] %v521_v18  ;;  %v805_v21 = vpop.f32.mrb[7].mxu1 }
 0x2a9   :  { %844 = vpow2.f32 %v406_v19  ;;  %v527_v22 = vmul.f32 1.442695, %v526_v20 }
 0x2ab   :  { %846 = vpow2.f32 %v527_v22 }
 0x2b3   :  { %v845_v23 = vpop.eup %844 }
 0x2b4   :  { %v408_v24 = vadd.f32 1.0, %v845_v23 }
 0x2b5   :  { %v847_v25 = vpop.eup %846 }
 0x2b6   :  { %848 = vlog2.f32 %v408_v24  ;;  %v530_v26 = vrot.slane %v847_v25, 4 }
 0x2b8   :  { %v532_v27 = vmul.f32 %v530_v26, %v525_v2 }
 0x2ba   :  { %v533_v28 = vadd.f32 %v532_v27, %v521_v18 }
 0x2bc   :  { %807 = vmatpush3.msk.msra.mxu0 %vm539_vm6, %v533_v28 }
 0x2bd   :  { %809 = vmatmul.mubr.msk.f32.vlgmr.msra.gmra.mrb[10].mxu0 %vm535_vm7, %v534_v29 }
 0x2c0   :  { %v849_v30 = vpop.eup %848 }
 0x2c1   :  { %v410_v31 = vmul.f32 0.6931472, %v849_v30 }
 0x2c3   :  { %v411_v32 = vadd.f32 1.0, %v410_v31 }
 0x2c5   :  { %v413_v33 = vrot.slane %v411_v32, 7 }
 0x2c7   :  { %v415_v34 = vadd.f32 %v413_v33, %v411_v32 }
 0x2c9   :  { %v416_v35 = vmax.f32 %v415_v34, 1e-06 }
 0x2cb   :  { %850 = vrcp.f32 %v416_v35 }
 0x2d5   :  { %v851_v38 = vpop.eup %850 }
 0x2d6   :  { %v419_v39 = vrot.slane %v851_v38, 1 }
 0x2d8   :  { %v421_v41 = vmul.f32 %v419_v39, %v411_v32 }
 0x2da   :  { %v422_v43 = vmul.f32 10.0, %v421_v41  ;;  %v424_v44 = vmul.f32 0.154333, %v421_v41 }
 0x2dc   :  { %v423_v45 = vadd.f32 -5.0, %v422_v43  ;;  %v443_v46 = vrot.slane %v424_v44, %v442_v40 }
 0x2de   :  { %v434_v48 = vrot.slane %v423_v45, %v433_v42  ;;  %v444_v51 = vmul.f32 %v443_v46, %v438_v47 }
 0x2e0   :  { %v435_v50 = vmul.f32 %v434_v48, %v429_v49 }
 0x2e2   :  { %v445_v52 = vadd.f32 %v444_v51, %v435_v50 }
 0x2e4   :  { %698 = vst [vmem:[#allocation2 + $0x10] sm:$0xff] %v445_v52 }
 0x390   :  { %v609_v53 = vpop.f32.mrb[10].mxu0 }
 0x391   :  { %v614_v54 = vmin.f32 %v609_v53, 0.0  ;;  %v810_v55 = vpop.f32.mrb[11].mxu0  ;;  %vm613_vm8 = vcmp.gt.f32.partialorder %v609_v53, 0.0 }
 0x393   :  { %v615_v56 = vmul.f32 1.442695, %v614_v54 }
 0x395   :  { %852 = vpow2.f32 %v615_v56 }
 0x39f   :  { %v853_v57 = vpop.eup %852 }
 0x3a0   :  { %v731_v58 = vadd.f32 -1.0, %v853_v57 }
 0x3a2   :  { %v618_v60 = vsel %vm613_vm8, %v609_v53, %v731_v58 }
 0x3a3   :  { %812 = vmatpush3.msk.msra.mxu1 %vm451_vm3, %v618_v60 }
 0x3a4   :  { %814 = vmatmul.mubr.msk.f32.vlgmr.msra.gmra.mrb[8].mxu1 %vm447_vm5, %v619_v59 }
 0x477   :  { %v692_v61 = vpop.f32.mrb[8].mxu1 }
 0x478   :  { %696 = vst [vmem:[#allocation2] sm:$0xff] %v692_v61  ;;  %v815_v62 = vpop.f32.mrb[9].mxu1 }
 0x479   :  { %865 = shalt.err (!%p862_p4)
}
 0x47a   :  { %s866_s27 = scalar_lea.hbm %s1089_s12, 384 }
 0x47b   :  { %p867_p5 = scmp.ne.s32.totalorder %s1089_s12, %s866_s27  ;;  %p870_p6 = scmp.lt.u32.totalorder %s866_s27, %s1089_s12 }
 0x47d   :  { %p872_p7 = pnand %p870_p6, %p867_p5 }
 0x47f   :  { %875 = shalt.err (!%p872_p7)
}
 0x480   :  { %s884_s14 = smov 128   ;;  %s885_s15 = smov 8  }
 0x481   :  { %710 = dma.vmem_to_hbm [thread:$0]  %s705_s3, 384, %s1089_s12, [#allocation3], %s884_s14, %s884_s14, %s885_s15  }
 0x482   :  { %876 = dma.done.wait [#allocation3], 384  }
 0x483   :  { %877 = vsyncadd [#allocation3], 4294966912 }
 0x484   :  { %714 = vsyncpa [#allocation3], 1 }

</bundles_post_ra>
